<compile_context>
chip_gen: v6e
topology: v6e:2x2x1
jax: 0.10.0
libtpu: 0.0.40
codegen_flags: <defaults>
</compile_context>

<pallas_src>
import functools

import jax
import jax.numpy as jnp
from jax import lax
from jax.experimental import pallas as pl
from jax.experimental.pallas import tpu as pltpu


def _tpu_vmem_capacity_bytes():
    """Physical VMEM bytes for the current TPU, or None if unknown."""
    try:
        return int(pltpu.get_tpu_info().vmem_capacity_bytes)
    except Exception:
        return None


def smooth_ce_kernel(n_total, tile_n, inv_c, sm_ref, x_ref, tgt_ref, loss_ref):
    # sm_ref   : SMEM (1,)      float32 -- smoothing factor (scalar prefetch)
    # x_ref    : VMEM (TN, C)   native  -- logit tile
    # tgt_ref  : VMEM (TN, 1)   int32   -- target class index per row
    # loss_ref : VMEM (TN, 1)   float32 -- per-row loss for this tile
    smoothing = sm_ref[0]
    confidence = 1.0 - smoothing

    x_nat = x_ref[...]                                   # (TN, C), native dtype
    rows, c = x_nat.shape

    # Row max and one-hot target select in the NATIVE dtype: both are exact in
    # bf16 and run at half vreg-width on v6e/v7x (bf16 VALU). On v5e Mosaic
    # upcasts internally, so this is never wrong, just faster where possible.
    row_max_nat = jnp.max(x_nat, axis=-1, keepdims=True)                 # (TN, 1)
    col = lax.broadcasted_iota(jnp.int32, (rows, c), 1)                  # (TN, C)
    tgt = tgt_ref[...]                                                   # (TN, 1)
    tgt_nat = jnp.sum(jnp.where(col == tgt, x_nat, jnp.zeros_like(x_nat)),
                      axis=-1, keepdims=True)                            # (TN, 1)

    row_max = row_max_nat.astype(jnp.float32)                            # (TN, 1)
    tgt_logit = tgt_nat.astype(jnp.float32)                              # (TN, 1)

    # Single live (TN, C) f32 working array: the max-shifted logits.  Both the
    # exp-sum (logsumexp) and the plain sum (row mean) are computed from it.
    x_shift = x_nat.astype(jnp.float32) - row_max                        # (TN, C)
    sum_exp = jnp.sum(jnp.exp(x_shift), axis=-1, keepdims=True)          # (TN, 1)
    sum_shift = jnp.sum(x_shift, axis=-1, keepdims=True)                 # (TN, 1)

    lse = row_max + jnp.log(sum_exp)                                     # (TN, 1)
    row_mean = sum_shift * inv_c + row_max                               # (TN, 1)

    # loss = confidence*(lse - x[t]) + smoothing*(lse - mean(x))
    #      = lse - confidence*x[t] - smoothing*mean(x)   (confidence+smoothing=1)
    loss = lse - confidence * tgt_logit - smoothing * row_mean           # (TN, 1)

    # Edge-tile rows past the true batch read undefined logits (exp of garbage
    # may be Inf/NaN): mask them so nothing undefined ever reaches HBM.  Their
    # out-of-bounds writes are also dropped by Pallas.
    row0 = pl.program_id(0) * tile_n
    ridx = row0 + lax.broadcasted_iota(jnp.int32, (rows, 1), 0)
    loss_ref[...] = jnp.where(ridx < n_total, loss, 0.0)


def smooth_cross_entropy(x, target, smoothing=0.0, *, tile_n=None):
    """Pallas equivalent of SmoothCrossEntropy.forward(x, target, smoothing)."""
    n, c = x.shape
    itemsize = jnp.dtype(x.dtype).itemsize
    # Sublane packing: 8 rows for f32, 16 for bf16, 32 for int8/fp8.
    mult = max(8, 32 // itemsize)

    phys_vmem = _tpu_vmem_capacity_bytes()
    if phys_vmem is None:
        phys_vmem = 64 * 1024 * 1024        # assume the smallest generation (v7x)
    # ~96 MiB scoped on v5e/v6e (128 MiB physical), ~48 MiB on v7x (64 MiB).
    vmem_limit = int(min(phys_vmem * 3 // 4, 96 * 1024 * 1024))

    if tile_n is None:
        # Size the tile against the REAL per-tile footprint:
        #   2x double-buffered native logits + f32 working set (upcast/shift/
        #   exp/select passes) + lane-padded (TN,1) target + loss buffers.
        budget = max(vmem_limit - 4 * 1024 * 1024, 8 * 1024 * 1024)
        per_row = 2 * c * itemsize + 4 * c * 4 + 4 * 128 * 4
        tile_n = max(mult, (budget // per_row) // mult * mult)
        if n > mult:
            # Keep >= 2 grid steps so the "parallel" axis can use both
            # TensorCores on v7x.
            half = (((n + 1) // 2) + mult - 1) // mult * mult
            tile_n = min(tile_n, half)
    if tile_n >= n:
        tile_n = n          # single full-extent block (always layout-legal)
    num_tiles = pl.cdiv(n, tile_n)

    tgt2d = target.astype(jnp.int32).reshape(n, 1)
    sm = jnp.asarray([smoothing], dtype=jnp.float32)

    kernel = functools.partial(smooth_ce_kernel, n, tile_n, 1.0 / c)

    cost = pl.CostEstimate(
        flops=6 * n * c,
        transcendentals=n * c,
        bytes_accessed=n * c * itemsize + n * 4 + n * 4,
    )

    per_row_loss = pl.pallas_call(
        kernel,
        out_shape=jax.ShapeDtypeStruct((n, 1), jnp.float32),
        grid_spec=pltpu.PrefetchScalarGridSpec(
            num_scalar_prefetch=1,
            grid=(num_tiles,),
            in_specs=[
                pl.BlockSpec((tile_n, c), lambda i, sm_ref: (i, 0)),   # logits
                pl.BlockSpec((tile_n, 1), lambda i, sm_ref: (i, 0)),   # targets
            ],
            out_specs=pl.BlockSpec((tile_n, 1), lambda i, sm_ref: (i, 0)),
        ),
        compiler_params=pltpu.CompilerParams(
            dimension_semantics=("parallel",),
            vmem_limit_bytes=vmem_limit,
        ),
        cost_estimate=cost,
    )(sm, x, tgt2d)

    # Tiny final reduction (N scalars) in the wrapper: divides by the true N.
    return jnp.sum(per_row_loss) * (1.0 / n)


def smooth_cross_entropy_ref(x, target, smoothing=0.0):
    """Pure-JAX reference (mirrors the PyTorch forward)."""
    confidence = 1.0 - smoothing
    logprobs = jax.nn.log_softmax(x.astype(jnp.float32), axis=-1)
    nll_loss = -jnp.take_along_axis(logprobs, target[:, None], axis=-1)[:, 0]
    smooth_loss = -jnp.mean(logprobs, axis=-1)
    loss = confidence * nll_loss + smoothing * smooth_loss
    return jnp.mean(loss)


if __name__ == "__main__":
    key = jax.random.PRNGKey(0)
    ks = jax.random.split(key, 8)

    # Case 1: f32, N divisible by tile -> 2 tiles (explicit tile_n).
    N, C = 16, 32
    x = jax.random.normal(ks[0], (N, C), dtype=jnp.float32)
    tgt = jax.random.randint(ks[1], (N,), 0, C, dtype=jnp.int32)
    out = jax.block_until_ready(smooth_cross_entropy(x, tgt, 0.1, tile_n=8))
    ref = smooth_cross_entropy_ref(x, tgt, 0.1)
    assert jnp.allclose(out, ref, atol=1e-5, rtol=1e-5), (out, ref)

    # Case 2: f32, N NOT divisible by tile (edge-tile masking), smoothing=0.
    N2, C2 = 12, 32
    x2 = jax.random.normal(ks[2], (N2, C2), dtype=jnp.float32)
    tgt2 = jax.random.randint(ks[3], (N2,), 0, C2, dtype=jnp.int32)
    out2 = jax.block_until_ready(smooth_cross_entropy(x2, tgt2, 0.0, tile_n=8))
    ref2 = smooth_cross_entropy_ref(x2, tgt2, 0.0)
    assert jnp.allclose(out2, ref2, atol=1e-5, rtol=1e-5), (out2, ref2)

    # Case 3: bf16 logits on the wire, automatic tile sizing (>= 2 tiles).
    N3, C3 = 32, 128
    x3 = jax.random.normal(ks[4], (N3, C3), dtype=jnp.float32).astype(jnp.bfloat16)
    tgt3 = jax.random.randint(ks[5], (N3,), 0, C3, dtype=jnp.int32)
    out3 = jax.block_until_ready(smooth_cross_entropy(x3, tgt3, 0.2))
    ref3 = smooth_cross_entropy_ref(x3, tgt3, 0.2)
    assert jnp.allclose(out3, ref3, atol=1e-3, rtol=1e-3), (out3, ref3)

    # Case 4: C not a multiple of 128 (lane-padded VMEM tiles), auto tiling.
    N4, C4 = 24, 1000
    x4 = jax.random.normal(ks[6], (N4, C4), dtype=jnp.float32)
    tgt4 = jax.random.randint(ks[7], (N4,), 0, C4, dtype=jnp.int32)
    out4 = jax.block_until_ready(smooth_cross_entropy(x4, tgt4, 0.05))
    ref4 = smooth_cross_entropy_ref(x4, tgt4, 0.05)
    assert jnp.allclose(out4, ref4, atol=1e-5, rtol=1e-5), (out4, ref4)

    print("KERNEL_OK")
</pallas_src>

<mosaic_0001>
module attributes {stable_mosaic.version = 11 : i64} {
  func.func @smooth_ce_kernel(%arg0: i32, %arg1: memref<1xf32, #tpu.memory_space<smem>>, %arg2: memref<8x32xf32, #tpu.memory_space<vmem>>, %arg3: memref<8x1xi32, #tpu.memory_space<vmem>>, %arg4: memref<8x1xf32, #tpu.memory_space<vmem>>) attributes {dimension_semantics = [#tpu.dimension_semantics<parallel>], iteration_bounds = array<i64: 2>, scalar_prefetch = 1 : i64, scratch_operands = 0 : i64, tpu.core_type = #tpu.core_type<tc>, window_params = [{transform_indices = @transform_0, window_bounds = array<i64: 8, 32>}, {transform_indices = @transform_1, window_bounds = array<i64: 8, 1>}, {transform_indices = @transform_2, window_bounds = array<i64: 8, 1>}]} {
    %c0 = arith.constant 0 : index
    %0 = memref.load %arg1[%c0] : memref<1xf32, #tpu.memory_space<smem>>
    %cst = arith.constant 1.000000e+00 : f32
    %1 = arith.subf %cst, %0 : f32
    %c0_0 = arith.constant 0 : index
    %c0_1 = arith.constant 0 : index
    %2 = vector.load %arg2[%c0_0, %c0_1] : memref<8x32xf32, #tpu.memory_space<vmem>>, vector<8x32xf32>
    %cst_2 = arith.constant dense<0xFF800000> : vector<8xf32>
    %3 = vector.multi_reduction <maximumf>, %2, %cst_2 [1] : vector<8x32xf32> to vector<8xf32>
    %4 = vector.shape_cast %3 : vector<8xf32> to vector<8x1xf32>
    %5 = tpu.iota {dimensions = array<i32: 1>} : vector<8x32xi32>
    %c0_3 = arith.constant 0 : index
    %c0_4 = arith.constant 0 : index
    %6 = vector.load %arg3[%c0_3, %c0_4] : memref<8x1xi32, #tpu.memory_space<vmem>>, vector<8x1xi32>
    %7 = vector.broadcast %6 : vector<8x1xi32> to vector<8x32xi32>
    %8 = arith.cmpi eq, %5, %7 : vector<8x32xi32>
    %cst_5 = arith.constant 0.000000e+00 : f32
    %9 = vector.broadcast %cst_5 : f32 to vector<8x32xf32>
    %10 = arith.select %8, %2, %9 : vector<8x32xi1>, vector<8x32xf32>
    %cst_6 = arith.constant dense<0.000000e+00> : vector<8xf32>
    %11 = vector.multi_reduction <add>, %10, %cst_6 [1] : vector<8x32xf32> to vector<8xf32>
    %12 = vector.shape_cast %11 : vector<8xf32> to vector<8x1xf32>
    %13 = vector.broadcast %4 : vector<8x1xf32> to vector<8x32xf32>
    %14 = arith.subf %2, %13 : vector<8x32xf32>
    %15 = math.exp %14 : vector<8x32xf32>
    %cst_7 = arith.constant dense<0.000000e+00> : vector<8xf32>
    %16 = vector.multi_reduction <add>, %15, %cst_7 [1] : vector<8x32xf32> to vector<8xf32>
    %17 = vector.shape_cast %16 : vector<8xf32> to vector<8x1xf32>
    %cst_8 = arith.constant dense<0.000000e+00> : vector<8xf32>
    %18 = vector.multi_reduction <add>, %14, %cst_8 [1] : vector<8x32xf32> to vector<8xf32>
    %19 = vector.shape_cast %18 : vector<8xf32> to vector<8x1xf32>
    %20 = math.log %17 : vector<8x1xf32>
    %21 = arith.addf %4, %20 : vector<8x1xf32>
    %cst_9 = arith.constant 3.125000e-02 : f32
    %22 = vector.broadcast %cst_9 : f32 to vector<8x1xf32>
    %23 = arith.mulf %19, %22 : vector<8x1xf32>
    %24 = arith.addf %23, %4 : vector<8x1xf32>
    %25 = vector.broadcast %1 : f32 to vector<8x1xf32>
    %26 = arith.mulf %25, %12 : vector<8x1xf32>
    %27 = arith.subf %21, %26 : vector<8x1xf32>
    %28 = vector.broadcast %0 : f32 to vector<8x1xf32>
    %29 = arith.mulf %28, %24 : vector<8x1xf32>
    %30 = arith.subf %27, %29 : vector<8x1xf32>
    %c8_i32 = arith.constant 8 : i32
    %31 = arith.muli %arg0, %c8_i32 : i32
    %32 = tpu.iota {dimensions = array<i32: 0>} : vector<8x1xi32>
    %33 = vector.broadcast %31 : i32 to vector<8x1xi32>
    %34 = arith.addi %33, %32 : vector<8x1xi32>
    %c16_i32 = arith.constant 16 : i32
    %35 = vector.broadcast %c16_i32 : i32 to vector<8x1xi32>
    %36 = arith.cmpi slt, %34, %35 : vector<8x1xi32>
    %cst_10 = arith.constant 0.000000e+00 : f32
    %37 = vector.broadcast %cst_10 : f32 to vector<8x1xf32>
    %38 = arith.select %36, %30, %37 : vector<8x1xi1>, vector<8x1xf32>
    %c0_11 = arith.constant 0 : index
    %c0_12 = arith.constant 0 : index
    %39 = vector.load %arg4[%c0_11, %c0_12] : memref<8x1xf32, #tpu.memory_space<vmem>>, vector<8x1xf32>
    tpu.vector_store %arg4[%c0_11, %c0_12], %38 {strides = array<i32>} : memref<8x1xf32, #tpu.memory_space<vmem>>, vector<8x1xf32>,
    return
  }
  func.func @transform_0(%arg0: i32, %arg1: memref<1xf32, #tpu.memory_space<smem>>) -> (i32, i32) {
    %c0_i32 = arith.constant 0 : i32
    %c0_i32_0 = arith.constant 0 : i32
    return %arg0, %c0_i32 : i32, i32
  }
  func.func @transform_1(%arg0: i32, %arg1: memref<1xf32, #tpu.memory_space<smem>>) -> (i32, i32) {
    %c0_i32 = arith.constant 0 : i32
    %c0_i32_0 = arith.constant 0 : i32
    return %arg0, %c0_i32 : i32, i32
  }
  func.func @transform_2(%arg0: i32, %arg1: memref<1xf32, #tpu.memory_space<smem>>) -> (i32, i32) {
    %c0_i32 = arith.constant 0 : i32
    %c0_i32_0 = arith.constant 0 : i32
    return %arg0, %c0_i32 : i32, i32
  }
}

</mosaic_0001>

<bundles_post_ra>
// kernel: tpu_custom_call.1
= control target key start
LH: loop header
LB: loop body
LE: loop exit
PB: predicated region body
PF: predicated region fallthrough
CT: control target
= control target key end

     0   :  { %s327_s14 = smov 0   ;;  %s361_s0 = inlined_call_operand.<no memory space> [shape: f32[1], index: 0, kind: input, shape index: {}]   ;;  %s362_s1 = inlined_call_operand.vmem [shape: f32[16,32], index: 1, kind: input, shape index: {}]   ;;  %s363_s2 = inlined_call_operand.vmem [shape: s32[16,1], index: 2, kind: input, shape index: {}]   ;;  %s364_s3 = inlined_call_operand.vmem [shape: f32[16,1], index: 3, kind: output, shape index: {}]  }
   0x1   :  { %8 = sst [smem:[#allocation3]] %s361_s0 }
   0x2 LB: > { %s333_s15 = sadd.s32 4294967295, %s301_s14   ;;  %p274_p0 = scmp.ge.s32.totalorder %s301_s14, 1  ;;  %s301_s14 = sphi %s327_s14, %s14_s14  }
   0x3   : > { %p122_p1 = scmp.lt.s32.totalorder %s301_s14, 3 }
   0x5   : > { %p123_p2 = pnand %p274_p0, %p122_p1 }
   0x6   : > { %p146_p3 = scmp.lt.s32.totalorder (!%p123_p2), %s333_s15, 1  ;;  %s158_s23 = sld [smem:[#allocation3]] (!%p123_p2) }
   0x7   : > { %126 = sbr.rel (%p123_p2) target bundleno = 337 (0x151), region = 28  ;;  %s278_s25 = sshll.u32 (!%p123_p2), %s333_s15, 3 }
   0xc   : > { %v303_v0 = vmov 0   ;;  %s147_s0 = scalar_select %p146_p3, %s333_s15, 1  ;;  %vm161_vm0 = vcmask 261120   ;;  %v165_v7 = vlaneseq  ;;  %v199_v21 = vstv %s278_s25 }
   0xd   : > { %290 = vset.pattern.permute.xlu0 %v303_v0  ;;  %s159_s24 = ssub.f32 1.0, %s158_s23  ;;  %v193_v26 = vstv %s158_s23  ;;  %vm203_vm3 = vcmask 7168  }
   0xe   : > { %s339_s16 = sshll.u32 %s147_s0, 3  ;;  %v166_v8 = vand.u32 127, %v165_v7  ;;  %v198_v18 = vshrl.u32 %v165_v7, 7 }
   0xf   : > { %s149_s19 = scalar_lea.vmem %s362_s1, %s339_s16  ;;  %s153_s22 = scalar_lea.vmem %s363_s2, %s339_s16  ;;  %v190_v19 = vstv %s159_s24 }
  0x10   : > { %v160_v1 = vld [vmem:[%s149_s19] sm:$0xff]  ;;  %v200_v27 = vadd.s32 %v199_v21, %v198_v18  ;;  %s157_s28 = scalar_lea.vmem %s364_s3, %s339_s16 }
  0x11   : > { %v162_v2 = vsel %vm161_vm0, %v160_v1, -inf  ;;  %v167_v3 = vld [vmem:[%s153_s22] sm:$0xff] }
  0x12   : > { %163 = vmax.xlane.f32.xlu0 %v162_v2  ;;  %vm201_vm2 = vcmp.lt.s32.totalorder %v200_v27, 16 }
  0x28   : > { %169 = vperm.xlu0 %290, %v167_v3  }
  0x9b   : > { %v164_v4 = vpop.xlane.xlu0 %163 }
  0x9c   : > { %v176_v5 = vsub.f32 %v160_v1, %v164_v4 }
  0x9e   : > { %v177_v6 = vmul.f32 1.442695, %v176_v5  ;;  %v182_v13 = vsel %vm161_vm0, %v176_v5, 0.0 }
  0xa0   : > { %291 = vpow2.f32 %v177_v6 }
  0xa3   : > { %v170_v9 = vpop.permute.xlu0 %169 }
  0xa4   : > { %vm171_vm1 = vcmp.eq.s32.totalorder %v166_v8, %v170_v9 }
  0xa5   : > { %v172_v12 = vsel %vm171_vm1, %v160_v1, 0.0 }
  0xa6   : > { %v173_v14 = vsel %vm161_vm0, %v172_v12, 0.0 }
  0xad   : > { %v292_v10 = vpop.eup %291 }
  0xae   : > { %v179_v11 = vsel %vm161_vm0, %v292_v10, 0.0 }
  0xaf   : > { %180 = vadd.xlane.f32.xlu1 %v179_v11 }
  0xb3   : > { %183 = vadd.xlane.f32.xlu1 %v182_v13 }
  0xb7   : > { %174 = vadd.xlane.f32.xlu1 %v173_v14 }
 0x138   : > { %v181_v15 = vpop.xlane.xlu1 %180 }
 0x139   : > { %293 = vlog2.f32 %v181_v15 }
 0x13c   : > { %v184_v16 = vpop.xlane.xlu1 %183 }
 0x13d   : > { %v188_v17 = vmul.f32 0.03125, %v184_v16 }
 0x13f   : > { %v189_v24 = vadd.f32 %v188_v17, %v164_v4 }
 0x140   : > { %v175_v20 = vpop.xlane.xlu1 %174 }
 0x141   : > { %v191_v25 = vmul.f32 %v190_v19, %v175_v20  ;;  %v194_v29 = vmul.f32 %v193_v26, %v189_v24 }
 0x146   : > { %v294_v22 = vpop.eup %293 }
 0x147   : > { %v186_v23 = vmul.f32 0.6931472, %v294_v22 }
 0x149   : > { %v187_v28 = vadd.f32 %v186_v23, %v164_v4 }
 0x14b   : > { %v192_v30 = vsub.f32 %v187_v28, %v191_v25 }
 0x14d   : > { %v195_v31 = vsub.f32 %v192_v30, %v194_v29 }
 0x14f   : > { %v202_v32 = vsel %vm201_vm2, %v195_v31, 0.0 }
 0x150   : > { %204 = vst.msk [vmem:[%s157_s28] sm:$0xff] %vm203_vm3, %v202_v32 }
 0x151 PF: > { %s14_s14 = sadd.s32 1, %s301_s14  }
 0x152   : > { %p11_p4 = scmp.ge.s32.totalorder %s14_s14, 4  }
 0x154   :  { %13 = sbr.rel (!%p11_p4) target bundleno = 2 (0x2), region = 61 }

</bundles_post_ra>
